<compile_context>
chip_gen: v7x
topology: tpu7x:2x2x1
jax: 0.10.0
libtpu: 0.0.40
codegen_flags: <defaults>
</compile_context>

<pallas_src>
import functools
import math

import jax
import jax.numpy as jnp
import numpy as np
from jax.experimental import pallas as pl
from jax.experimental.pallas import tpu as pltpu

_LANES = 128


def _cox_loss_kernel(scores_ref, status_ref, out_ref, *, batch: int):
    # scores_ref / status_ref: (1, Bp) f32, sorted by descending event time,
    # zero-padded in lanes [batch, Bp).
    s = scores_ref[...]            # (1, Bp)
    st = status_ref[...]           # (1, Bp)
    bp = s.shape[-1]

    lane = jax.lax.broadcasted_iota(jnp.int32, (1, bp), 1)
    valid = lane < batch

    # Numerical stabilization: subtract the max over the *real* entries only.
    m = jnp.max(jnp.where(valid, s, -jnp.inf))
    sh = s - m                                         # finite everywhere (pads are 0 - m)
    ex = jnp.where(valid, jnp.exp(sh), 0.0)            # padded lanes contribute nothing

    # Inclusive prefix sum along the lane axis (Hillis-Steele scan):
    # log2(Bp) rounds of XLU roll + masked VPU add; no MXU, no (B,B) mask.
    cs = ex
    d = 1
    while d < bp:
        rolled = pltpu.roll(cs, shift=d, axis=1)       # rolled[i] = cs[i - d] (wraps)
        cs = cs + jnp.where(lane >= d, rolled, 0.0)    # drop the wrapped-around lanes
        d *= 2

    loss = sh - jnp.log(cs + 1e-5)
    loss = jnp.where(valid, -loss * st, 0.0)

    # .mean() over the real batch; scalar lands directly in SMEM.
    out_ref[0, 0] = jnp.sum(loss) * (1.0 / batch)


def cox_loss_pallas(cox_scores, times, status):
    """Pallas implementation of cox_loss(cox_scores, times, status)."""
    b = cox_scores.shape[0]
    bp = ((b + _LANES - 1) // _LANES) * _LANES         # pad batch to lane multiple

    # Fused descending-time sort: key is -times, scores/status ride along as
    # values (replaces argsort + two separate gather passes over HBM).
    # TODO(synk): the sort itself has no clean Pallas TPU equivalent; it stays
    # as XLA glue in the wrapper (stable, like torch.sort; ties may still order
    # differently than PyTorch).
    neg_t = -times.astype(jnp.float32)
    _, s_sorted, st_sorted = jax.lax.sort(
        (neg_t, cox_scores.astype(jnp.float32), status.astype(jnp.float32)),
        num_keys=1,
        is_stable=True,
    )

    pad = bp - b
    s = jnp.pad(s_sorted, (0, pad)).reshape(1, bp)     # padded lanes: score 0, status 0
    st = jnp.pad(st_sorted, (0, pad)).reshape(1, bp)   # (masked out inside the kernel)

    n_rounds = max(1, int(math.ceil(math.log2(bp))))
    cost = pl.CostEstimate(
        flops=int(bp * (2 * n_rounds + 8)),
        transcendentals=int(2 * bp),
        bytes_accessed=int(2 * bp * 4 + 4),
    )

    # TODO(synk): single-block kernel (grid=()); for very large B this should be
    # tiled over a grid with a running-carry scratch (flash-softmax style).
    out = pl.pallas_call(
        functools.partial(_cox_loss_kernel, batch=b),
        out_shape=jax.ShapeDtypeStruct((1, 1), jnp.float32),
        in_specs=[
            pl.BlockSpec((1, bp), lambda: (0, 0)),
            pl.BlockSpec((1, bp), lambda: (0, 0)),
        ],
        out_specs=pl.BlockSpec(memory_space=pltpu.MemorySpace.SMEM),
        cost_estimate=cost,
    )(s, st)
    return out[0, 0]


def cox_loss_reference(cox_scores, times, status):
    """Pure-JAX reference mirroring the PyTorch code (for validation)."""
    order = jnp.argsort(-times)
    s = cox_scores[order].astype(jnp.float32)
    st = status[order].astype(jnp.float32)
    s = s - jnp.max(s)
    ex = jnp.exp(s)
    loss = s - jnp.log(jnp.cumsum(ex) + 1e-5)
    loss = -loss * st
    # TODO(synk): the `(loss != loss).any()` pdb NaN-debug branch has no kernel
    # equivalent and is intentionally omitted.
    return jnp.mean(loss)


if __name__ == "__main__":
    key = jax.random.PRNGKey(0)
    k1, k2, k3 = jax.random.split(key, 3)

    B = 8
    cox_scores = jax.random.normal(k1, (B,), dtype=jnp.float32)
    times = jax.random.uniform(k2, (B,), dtype=jnp.float32, minval=0.1, maxval=10.0)
    status = (jax.random.uniform(k3, (B,)) > 0.5).astype(jnp.float32)

    out = jax.block_until_ready(cox_loss_pallas(cox_scores, times, status))
    ref = jax.block_until_ready(cox_loss_reference(cox_scores, times, status))
    np.testing.assert_allclose(np.asarray(out), np.asarray(ref), rtol=1e-5, atol=1e-5)

    print("KERNEL_OK")
</pallas_src>

<mosaic_0001>
module attributes {stable_mosaic.version = 11 : i64} {
  func.func @_cox_loss_kernel(%arg0: memref<1x128xf32, #tpu.memory_space<vmem>>, %arg1: memref<1x128xf32, #tpu.memory_space<vmem>>, %arg2: memref<1x1xf32, #tpu.memory_space<smem>>) attributes {dimension_semantics = [], scalar_prefetch = 0 : i64, scratch_operands = 0 : i64, tpu.core_type = #tpu.core_type<tc>} {
    %c0 = arith.constant 0 : index
    %c0_0 = arith.constant 0 : index
    %0 = vector.load %arg0[%c0, %c0_0] : memref<1x128xf32, #tpu.memory_space<vmem>>, vector<1x128xf32>
    %c0_1 = arith.constant 0 : index
    %c0_2 = arith.constant 0 : index
    %1 = vector.load %arg1[%c0_1, %c0_2] : memref<1x128xf32, #tpu.memory_space<vmem>>, vector<1x128xf32>
    %2 = tpu.iota {dimensions = array<i32: 1>} : vector<1x128xi32>
    %c8_i32 = arith.constant 8 : i32
    %3 = vector.broadcast %c8_i32 : i32 to vector<1x128xi32>
    %4 = arith.cmpi slt, %2, %3 : vector<1x128xi32>
    %cst = arith.constant 0xFF800000 : f32
    %5 = vector.broadcast %cst : f32 to vector<1x128xf32>
    %6 = arith.select %4, %0, %5 : vector<1x128xi1>, vector<1x128xf32>
    %7 = vector.shape_cast %6 : vector<1x128xf32> to vector<1x1x128xf32>
    %cst_3 = arith.constant dense<0xFF800000> : vector<1xf32>
    %8 = vector.multi_reduction <maximumf>, %7, %cst_3 [1, 2] : vector<1x1x128xf32> to vector<1xf32>
    %9 = vector.shape_cast %8 : vector<1xf32> to vector<1x1x1xf32>
    %10 = vector.extract %9[0, 0, 0] : f32 from vector<1x1x1xf32>
    %11 = vector.broadcast %10 : f32 to vector<1x128xf32>
    %12 = arith.subf %0, %11 : vector<1x128xf32>
    %13 = math.exp %12 : vector<1x128xf32>
    %cst_4 = arith.constant 0.000000e+00 : f32
    %14 = vector.broadcast %cst_4 : f32 to vector<1x128xf32>
    %15 = arith.select %4, %13, %14 : vector<1x128xi1>, vector<1x128xf32>
    %c1_i32 = arith.constant 1 : i32
    %16 = tpu.dynamic_rotate %15 by %c1_i32 dim 1 : vector<1x128xf32>, i32 -> vector<1x128xf32>
    %c1_i32_5 = arith.constant 1 : i32
    %17 = vector.broadcast %c1_i32_5 : i32 to vector<1x128xi32>
    %18 = arith.cmpi sge, %2, %17 : vector<1x128xi32>
    %cst_6 = arith.constant 0.000000e+00 : f32
    %19 = vector.broadcast %cst_6 : f32 to vector<1x128xf32>
    %20 = arith.select %18, %16, %19 : vector<1x128xi1>, vector<1x128xf32>
    %21 = arith.addf %15, %20 : vector<1x128xf32>
    %c2_i32 = arith.constant 2 : i32
    %22 = tpu.dynamic_rotate %21 by %c2_i32 dim 1 : vector<1x128xf32>, i32 -> vector<1x128xf32>
    %c2_i32_7 = arith.constant 2 : i32
    %23 = vector.broadcast %c2_i32_7 : i32 to vector<1x128xi32>
    %24 = arith.cmpi sge, %2, %23 : vector<1x128xi32>
    %cst_8 = arith.constant 0.000000e+00 : f32
    %25 = vector.broadcast %cst_8 : f32 to vector<1x128xf32>
    %26 = arith.select %24, %22, %25 : vector<1x128xi1>, vector<1x128xf32>
    %27 = arith.addf %21, %26 : vector<1x128xf32>
    %c4_i32 = arith.constant 4 : i32
    %28 = tpu.dynamic_rotate %27 by %c4_i32 dim 1 : vector<1x128xf32>, i32 -> vector<1x128xf32>
    %c4_i32_9 = arith.constant 4 : i32
    %29 = vector.broadcast %c4_i32_9 : i32 to vector<1x128xi32>
    %30 = arith.cmpi sge, %2, %29 : vector<1x128xi32>
    %cst_10 = arith.constant 0.000000e+00 : f32
    %31 = vector.broadcast %cst_10 : f32 to vector<1x128xf32>
    %32 = arith.select %30, %28, %31 : vector<1x128xi1>, vector<1x128xf32>
    %33 = arith.addf %27, %32 : vector<1x128xf32>
    %c8_i32_11 = arith.constant 8 : i32
    %34 = tpu.dynamic_rotate %33 by %c8_i32_11 dim 1 : vector<1x128xf32>, i32 -> vector<1x128xf32>
    %c8_i32_12 = arith.constant 8 : i32
    %35 = vector.broadcast %c8_i32_12 : i32 to vector<1x128xi32>
    %36 = arith.cmpi sge, %2, %35 : vector<1x128xi32>
    %cst_13 = arith.constant 0.000000e+00 : f32
    %37 = vector.broadcast %cst_13 : f32 to vector<1x128xf32>
    %38 = arith.select %36, %34, %37 : vector<1x128xi1>, vector<1x128xf32>
    %39 = arith.addf %33, %38 : vector<1x128xf32>
    %c16_i32 = arith.constant 16 : i32
    %40 = tpu.dynamic_rotate %39 by %c16_i32 dim 1 : vector<1x128xf32>, i32 -> vector<1x128xf32>
    %c16_i32_14 = arith.constant 16 : i32
    %41 = vector.broadcast %c16_i32_14 : i32 to vector<1x128xi32>
    %42 = arith.cmpi sge, %2, %41 : vector<1x128xi32>
    %cst_15 = arith.constant 0.000000e+00 : f32
    %43 = vector.broadcast %cst_15 : f32 to vector<1x128xf32>
    %44 = arith.select %42, %40, %43 : vector<1x128xi1>, vector<1x128xf32>
    %45 = arith.addf %39, %44 : vector<1x128xf32>
    %c32_i32 = arith.constant 32 : i32
    %46 = tpu.dynamic_rotate %45 by %c32_i32 dim 1 : vector<1x128xf32>, i32 -> vector<1x128xf32>
    %c32_i32_16 = arith.constant 32 : i32
    %47 = vector.broadcast %c32_i32_16 : i32 to vector<1x128xi32>
    %48 = arith.cmpi sge, %2, %47 : vector<1x128xi32>
    %cst_17 = arith.constant 0.000000e+00 : f32
    %49 = vector.broadcast %cst_17 : f32 to vector<1x128xf32>
    %50 = arith.select %48, %46, %49 : vector<1x128xi1>, vector<1x128xf32>
    %51 = arith.addf %45, %50 : vector<1x128xf32>
    %c64_i32 = arith.constant 64 : i32
    %52 = tpu.dynamic_rotate %51 by %c64_i32 dim 1 : vector<1x128xf32>, i32 -> vector<1x128xf32>
    %c64_i32_18 = arith.constant 64 : i32
    %53 = vector.broadcast %c64_i32_18 : i32 to vector<1x128xi32>
    %54 = arith.cmpi sge, %2, %53 : vector<1x128xi32>
    %cst_19 = arith.constant 0.000000e+00 : f32
    %55 = vector.broadcast %cst_19 : f32 to vector<1x128xf32>
    %56 = arith.select %54, %52, %55 : vector<1x128xi1>, vector<1x128xf32>
    %57 = arith.addf %51, %56 : vector<1x128xf32>
    %cst_20 = arith.constant 9.99999974E-6 : f32
    %58 = vector.broadcast %cst_20 : f32 to vector<1x128xf32>
    %59 = arith.addf %57, %58 : vector<1x128xf32>
    %60 = math.log %59 : vector<1x128xf32>
    %61 = arith.subf %12, %60 : vector<1x128xf32>
    %cst_21 = arith.constant 0.000000e+00 : f32
    %62 = vector.broadcast %cst_21 : f32 to vector<1x128xf32>
    %63 = arith.subf %62, %61 : vector<1x128xf32>
    %64 = arith.mulf %63, %1 : vector<1x128xf32>
    %cst_22 = arith.constant 0.000000e+00 : f32
    %65 = vector.broadcast %cst_22 : f32 to vector<1x128xf32>
    %66 = arith.select %4, %64, %65 : vector<1x128xi1>, vector<1x128xf32>
    %67 = vector.shape_cast %66 : vector<1x128xf32> to vector<1x1x128xf32>
    %cst_23 = arith.constant dense<0.000000e+00> : vector<1xf32>
    %68 = vector.multi_reduction <add>, %67, %cst_23 [1, 2] : vector<1x1x128xf32> to vector<1xf32>
    %69 = vector.shape_cast %68 : vector<1xf32> to vector<1x1x1xf32>
    %70 = vector.extract %69[0, 0, 0] : f32 from vector<1x1x1xf32>
    %cst_24 = arith.constant 1.250000e-01 : f32
    %71 = arith.mulf %70, %cst_24 : f32
    %c0_25 = arith.constant 0 : index
    %c0_26 = arith.constant 0 : index
    %72 = memref.load %arg2[%c0_25, %c0_26] : memref<1x1xf32, #tpu.memory_space<smem>>
    memref.store %71, %arg2[%c0_25, %c0_26] : memref<1x1xf32, #tpu.memory_space<smem>>
    return
  }
}

</mosaic_0001>

<bundles_post_ra>
// kernel: tpu_custom_call.1
= control target key start
LH: loop header
LB: loop body
LE: loop exit
PB: predicated region body
PF: predicated region fallthrough
CT: control target
= control target key end

     0   :  { %7 = vsyncpa [#allocation3], 0  ;;  %s237_s0 = inlined_call_operand.hbm [shape: f32[1,128], index: 0, kind: input, shape index: {}]   ;;  %s238_s1 = inlined_call_operand.vmem [shape: f32[1,128], index: 1, kind: input, shape index: {}]   ;;  %s239_s2 = inlined_call_operand.hbm [shape: f32[1,1], index: 2, kind: output, shape index: {}]  }
   0x1   :  { %8 = vsyncpa [#allocation4], 0  ;;  %s168_s9 = smov [#allocation2]   ;;  %s132_s13 = scalar_lea.hbm %s237_s0, 16 }
   0x2   :  { %s15_s10 = sshll.u32 %s168_s9, 4  ;;  %p133_p0 = scmp.ne.s32.totalorder %s237_s0, %s132_s13  ;;  %s16_s10 = int_to_ptr.vmem [resolvable:$true] %s15_s10 }
   0x3   :  { %p136_p1 = scmp.lt.u32.totalorder %s132_s13, %s237_s0 }
   0x5   :  { %p138_p2 = pnand %p136_p1, %p133_p0 }
   0x7   :  { %141 = shalt.err (!%p138_p2)
}
   0x8   :  { %s142_s18 = scalar_lea.vmem %s16_s10, 16  ;;  %s146_s19 = scalar_lea.vmem %s16_s10, 32 }
   0x9   :  { %p143_p3 = scmp.ne.s32.totalorder %s16_s10, %s142_s18  ;;  %p147_p4 = scmp.lt.s32.totalorder %s16_s10, %s16_s10 }
   0xa   :  { %p148_p5 = scmp.lt.s32.totalorder %s146_s19, %s142_s18 }
   0xc   :  { %p149_p6 = por %p148_p5, %p147_p4 }
   0xe   :  { %p150_p7 = pnand %p149_p6, %p143_p3 }
  0x10   :  { %153 = shalt.err (!%p150_p7)
}
  0x11   :  { %18 = dma.hbm_to_vmem [thread:$0]  %s237_s0, 16, %s16_s10, [#allocation3]  }
  0x12   :  { %164 = dma.done.wait [#allocation3], 16  }
  0x13   :  { %165 = vsyncadd [#allocation3], 4294967280  ;;  %v26_v0 = vlaneseq  ;;  %vm30_vm1 = vcmask 1040384   ;;  %v24_v2 = vld [vmem:[#allocation2] sm:$0x1]  ;;  %s169_s22 = smov 1  }
  0x14   :  { %s170_s23 = smov 2   ;;  %s171_s24 = smov 4   ;;  %v25_v42 = vld [vmem:[%s238_s1] sm:$0x1] }
  0x15   :  { %v204_v1 = vand.u32 127, %v26_v0  ;;  %s172_s25 = smov 8   ;;  %s173_s26 = smov 16  }
  0x16   :  { %s174_s27 = smov 32   ;;  %s175_s28 = smov 64  }
  0x17   :  { %vm28_vm0 = vcmp.lt.s32.totalorder %v204_v1, 8  ;;  %vm48_vm2 = vcmp.ge.s32.totalorder %v204_v1, 1  ;;  %vm53_vm3 = vcmp.ge.s32.totalorder %v204_v1, 2  ;;  %vm58_vm4 = vcmp.ge.s32.totalorder %v204_v1, 4  ;;  %s154_s6 = scalar_lea.hbm %s239_s2, 16 }
  0x18   :  { %v29_v3 = vsel %vm28_vm0, %v24_v2, -inf  ;;  %vm63_vm5 = vcmp.ge.s32.totalorder %v204_v1, 8  ;;  %vm68_vm6 = vcmp.ge.s32.totalorder %v204_v1, 16  ;;  %vm73_vm7 = vcmp.ge.s32.totalorder %v204_v1, 32  ;;  %p155_p8 = scmp.ne.s32.totalorder %s239_s2, %s154_s6  ;;  %p158_p9 = scmp.lt.u32.totalorder %s154_s6, %s239_s2 }
  0x19   :  { %v31_v4 = vsel %vm30_vm1, %v29_v3, -inf  ;;  %vm78_vm8 = vcmp.ge.s32.totalorder %v204_v1, 64 }
  0x1a   :  { %32 = vmax.xlane.f32.xlu0 %v31_v4  ;;  %p160_p10 = pnand %p158_p9, %p155_p8 }
  0xa7   :  { %v33_v5 = vpop.xlane.xlu0 %32 }
  0xa8   :  { %v34_v6 = vrot.slane %v33_v5, 4 }
  0xaa   :  { %v35_v7 = vmax.f32 %v33_v5, %v34_v6 }
  0xac   :  { %v36_v8 = vrot.slane %v35_v7, 2 }
  0xae   :  { %v37_v9 = vmax.f32 %v35_v7, %v36_v8 }
  0xb0   :  { %v38_v10 = vrot.slane %v37_v9, 1 }
  0xb2   :  { %v39_v11 = vmax.f32 %v37_v9, %v38_v10 }
  0xb4   :  { %115 = vpush %v39_v11 }
  0xe5   :  { %s116_s0 = spop %115 }
  0xe6   :  { %v41_v12 = vstv %s116_s0 }
  0xe7   :  { %v42_v13 = vsub.f32 %v24_v2, %v41_v12 }
  0xe9   :  { %v43_v14 = vmul.f32 1.442695, %v42_v13 }
  0xeb   :  { %128 = vpow2.f32 %v43_v14 }
  0xf5   :  { %v129_v15 = vpop.eup %128 }
  0xf6   :  { %v45_v16 = vsel %vm28_vm0, %v129_v15, 0.0 }
  0xf7   :  { %46 = vrot.lane.b32.xlu0 %v45_v16, %s169_s22 }
 0x169   :  { %v47_v17 = vpop.permute.xlu0 %46 }
 0x16a   :  { %v49_v18 = vsel %vm48_vm2, %v47_v17, 0.0 }
 0x16b   :  { %v50_v19 = vadd.f32 %v49_v18, %v45_v16 }
 0x16d   :  { %51 = vrot.lane.b32.xlu1 %v50_v19, %s170_s23 }
 0x1df   :  { %v52_v20 = vpop.permute.xlu1 %51 }
 0x1e0   :  { %v54_v21 = vsel %vm53_vm3, %v52_v20, 0.0 }
 0x1e1   :  { %v55_v22 = vadd.f32 %v54_v21, %v50_v19 }
 0x1e3   :  { %56 = vrot.lane.b32.xlu1 %v55_v22, %s171_s24 }
 0x255   :  { %v57_v23 = vpop.permute.xlu1 %56 }
 0x256   :  { %v59_v24 = vsel %vm58_vm4, %v57_v23, 0.0 }
 0x257   :  { %v60_v25 = vadd.f32 %v59_v24, %v55_v22 }
 0x259   :  { %61 = vrot.lane.b32.xlu1 %v60_v25, %s172_s25 }
 0x2cb   :  { %v62_v26 = vpop.permute.xlu1 %61 }
 0x2cc   :  { %v64_v27 = vsel %vm63_vm5, %v62_v26, 0.0 }
 0x2cd   :  { %v65_v28 = vadd.f32 %v64_v27, %v60_v25 }
 0x2cf   :  { %66 = vrot.lane.b32.xlu1 %v65_v28, %s173_s26 }
 0x341   :  { %v67_v29 = vpop.permute.xlu1 %66 }
 0x342   :  { %v69_v30 = vsel %vm68_vm6, %v67_v29, 0.0 }
 0x343   :  { %v70_v31 = vadd.f32 %v69_v30, %v65_v28 }
 0x345   :  { %71 = vrot.lane.b32.xlu1 %v70_v31, %s174_s27 }
 0x3b7   :  { %v72_v32 = vpop.permute.xlu1 %71 }
 0x3b8   :  { %v74_v33 = vsel %vm73_vm7, %v72_v32, 0.0 }
 0x3b9   :  { %v75_v34 = vadd.f32 %v74_v33, %v70_v31 }
 0x3bb   :  { %76 = vrot.lane.b32.xlu1 %v75_v34, %s175_s28 }
 0x42d   :  { %v77_v35 = vpop.permute.xlu1 %76 }
 0x42e   :  { %v79_v36 = vsel %vm78_vm8, %v77_v35, 0.0 }
 0x42f   :  { %v80_v37 = vadd.f32 %v79_v36, %v75_v34 }
 0x431   :  { %v81_v38 = vadd.f32 1e-05, %v80_v37 }
 0x433   :  { %130 = vlog2.f32 %v81_v38 }
 0x43d   :  { %v131_v39 = vpop.eup %130 }
 0x43e   :  { %v83_v40 = vmul.f32 0.6931472, %v131_v39 }
 0x440   :  { %v84_v41 = vsub.f32 %v42_v13, %v83_v40 }
 0x442   :  { %v85_v43 = vsub.f32 0.0, %v84_v41 }
 0x444   :  { %v86_v44 = vmul.f32 %v85_v43, %v25_v42 }
 0x446   :  { %v87_v45 = vsel %vm28_vm0, %v86_v44, 0.0 }
 0x447   :  { %v88_v46 = vsel %vm30_vm1, %v87_v45, 0.0 }
 0x448   :  { %89 = vadd.xlane.f32.xlu1 %v88_v46 }
 0x4d5   :  { %v90_v47 = vpop.xlane.xlu1 %89 }
 0x4d6   :  { %v91_v48 = vrot.slane %v90_v47, 4 }
 0x4d8   :  { %v92_v49 = vadd.f32 %v91_v48, %v90_v47 }
 0x4da   :  { %v93_v50 = vrot.slane %v92_v49, 2 }
 0x4dc   :  { %v94_v51 = vadd.f32 %v93_v50, %v92_v49 }
 0x4de   :  { %v95_v52 = vrot.slane %v94_v51, 1 }
 0x4e0   :  { %v96_v53 = vadd.f32 %v95_v52, %v94_v51 }
 0x4e2   :  { %117 = vpush %v96_v53 }
 0x513   :  { %s118_s3 = spop %117 }
 0x514   :  { %s98_s4 = smul.f32 0.125, %s118_s3 }
 0x516   :  { %100 = sst [smem:[#allocation5]] %s98_s4 }
 0x517   :  { %163 = shalt.err (!%p160_p10)
}
 0x518   :  { %s176_s11 = smov [#allocation5]  }
 0x519   :  { %108 = dma.smem_to_hbm %s176_s11, 16, %s239_s2, [#allocation4]  }
 0x51a   :  { %166 = dma.done.wait [#allocation4], 16  }
 0x51b   :  { %167 = vsyncadd [#allocation4], 4294967280 }
 0x51c   :  { %112 = sfence }
 0x51d   :  { %113 = vsyncpa [#allocation3], 1 }
 0x51e   :  { %114 = vsyncpa [#allocation4], 1 }

</bundles_post_ra>
